<compile_context>
chip_gen: v7x
topology: tpu7x:2x2x1
jax: 0.10.0
libtpu: 0.0.40
codegen_flags: <defaults>
</compile_context>

<pallas_src>
import functools

import jax
import jax.numpy as jnp
import numpy as np
from jax import lax
from jax.experimental import pallas as pl
from jax.experimental.pallas import tpu as pltpu

_OUT_PAD = 128  # lane-dense output tile width


def _lstm_fc_kernel(xf_ref, wih_ref, whh_ref, b_ref, wfc_ref, bfc_ref,
                    out_ref, proj_ref, *, seq_len, batch, hidden_size):
    """Single-invocation LSTM recurrence + FC.

    xf_ref  : (T*B, D)   bf16  time-major flattened features (all steps)
    wih_ref : (D, 4H)    bf16  W_ih^T
    whh_ref : (H, 4H)    bf16  W_hh^T (only weight on the per-step chain)
    b_ref   : (1, 4H)    f32   b_ih + b_hh
    wfc_ref : (H, 128)   bf16  W_fc^T zero-padded to a full lane tile
    bfc_ref : (1, 128)   f32   b_fc zero-padded
    out_ref : (B, 128)   f32   lane-dense output (sliced outside)
    proj_ref: (T*B, 4H)  f32   VMEM scratch holding the hoisted projection
    """
    H = hidden_size
    B = batch

    # Hoisted input projection: one bf16->f32 MXU matmul covers every time
    # step; staged into VMEM scratch so the serial loop reads via vld instead
    # of keeping the whole tensor live in vregs.
    proj_ref[...] = (
        jnp.dot(xf_ref[...], wih_ref[...],
                preferred_element_type=jnp.float32)
        + b_ref[...])                                         # (T*B, 4H) f32

    whh = whh_ref[...]                                        # (H, 4H) bf16

    h = jnp.zeros((B, H), jnp.float32)
    c = jnp.zeros((B, H), jnp.float32)

    # Fully unrolled static loop (T is small and known at trace time).
    for t in range(seq_len):
        gates = proj_ref[pl.ds(t * B, B), :] + jnp.dot(
            h.astype(jnp.bfloat16), whh,
            preferred_element_type=jnp.float32)               # (B, 4H) f32

        # Two full-tile EUP passes (sigmoid + tanh on the whole gates tile)
        # instead of four sliced 32-lane transcendentals.
        sig = jax.nn.sigmoid(gates)
        tg = jnp.tanh(gates)

        # PyTorch gate order: i, f, g, o (static slices; 4H == 128 here).
        i_g = sig[:, 0 * H:1 * H]
        f_g = sig[:, 1 * H:2 * H]
        g_g = tg[:, 2 * H:3 * H]
        o_g = sig[:, 3 * H:4 * H]

        # c update (VPU, f32) overlaps the EUP drain of the tanh(c) below.
        c = f_g * c + i_g * g_g
        h = o_g * jnp.tanh(c)

    # fc(h_n[-1]) into a lane-dense (B, 128) tile.
    out_ref[...] = (
        jnp.dot(h.astype(jnp.bfloat16), wfc_ref[...],
                preferred_element_type=jnp.float32)
        + bfc_ref[...]).astype(out_ref.dtype)


def lstm_fc_pallas(xflat, w_ih_t, w_hh_t, bias, w_fc_t_pad, b_fc_pad,
                   *, seq_len, batch, hidden_size):
    """xflat: (T*B, D) bf16 time-major.  Returns lane-padded (B, 128) f32."""
    kernel = functools.partial(_lstm_fc_kernel, seq_len=seq_len, batch=batch,
                               hidden_size=hidden_size)
    vmem_spec = pl.BlockSpec(memory_space=pltpu.MemorySpace.VMEM)
    return pl.pallas_call(
        kernel,
        out_shape=jax.ShapeDtypeStruct((batch, _OUT_PAD), jnp.float32),
        in_specs=[vmem_spec] * 6,
        out_specs=vmem_spec,
        scratch_shapes=[
            pltpu.VMEM((seq_len * batch, 4 * hidden_size), jnp.float32),
        ],
    )(xflat, w_ih_t, w_hh_t, bias, w_fc_t_pad, b_fc_pad)


def prepare_params(params):
    """One-time weight prep: transpose, fuse biases, lane-pad FC, cast bf16."""
    hidden_size = params["w_hh"].shape[1]
    num_classes = params["w_fc"].shape[0]

    w_fc_t = jnp.transpose(params["w_fc"])                    # (H, num_classes)
    w_fc_pad = jnp.zeros((hidden_size, _OUT_PAD), jnp.float32)
    w_fc_pad = w_fc_pad.at[:, :num_classes].set(w_fc_t)
    b_fc_pad = jnp.zeros((1, _OUT_PAD), jnp.float32)
    b_fc_pad = b_fc_pad.at[:, :num_classes].set(params["b_fc"])

    return {
        "w_ih_t": jnp.transpose(params["w_ih"]).astype(jnp.bfloat16),  # (D,4H)
        "w_hh_t": jnp.transpose(params["w_hh"]).astype(jnp.bfloat16),  # (H,4H)
        "bias": (params["b_ih"] + params["b_hh"])[None, :]
                .astype(jnp.float32),                                   # (1,4H)
        "w_fc_pad": w_fc_pad.astype(jnp.bfloat16),                      # (H,128)
        "b_fc_pad": b_fc_pad,                                           # (1,128)
        "hidden_size": hidden_size,
        "num_classes": num_classes,
    }


def custom_model_forward(x, prep):
    """Mirrors CustomModel.forward from the view(...) line onward.

    x: (batch, seq, c, h, w) feature tensor (what the forward unpacks).
    prep: output of prepare_params().
    """
    B, T, C, Hh, W = x.shape
    D = C * Hh * W
    feat = x.reshape(B, T, D)                    # x = x.view(batch, seq, -1)
    # TODO(synk): at production D, keep features batch-major and index (b, t)
    #   in-kernel to drop this extra HBM pass over the feature tensor.
    xs = jnp.transpose(feat, (1, 0, 2))          # (T, B, D) time-major
    xflat = xs.reshape(T * B, D).astype(jnp.bfloat16)

    out_pad = lstm_fc_pallas(
        xflat, prep["w_ih_t"], prep["w_hh_t"], prep["bias"],
        prep["w_fc_pad"], prep["b_fc_pad"],
        seq_len=T, batch=B, hidden_size=prep["hidden_size"])
    return out_pad[:, :prep["num_classes"]]


def _reference_forward(x, params):
    """Pure-JAX f32 reference (lax.scan LSTM) to validate the kernel."""
    B, T, C, Hh, W = x.shape
    feat = x.reshape(B, T, -1)
    Hs = params["w_hh"].shape[1]

    def step(carry, x_t):
        h, c = carry
        gates = (x_t @ params["w_ih"].T + h @ params["w_hh"].T
                 + params["b_ih"] + params["b_hh"])
        i = jax.nn.sigmoid(gates[:, 0 * Hs:1 * Hs])
        f = jax.nn.sigmoid(gates[:, 1 * Hs:2 * Hs])
        g = jnp.tanh(gates[:, 2 * Hs:3 * Hs])
        o = jax.nn.sigmoid(gates[:, 3 * Hs:4 * Hs])
        c = f * c + i * g
        h = o * jnp.tanh(c)
        return (h, c), None

    h0 = jnp.zeros((B, Hs), jnp.float32)
    (h_n, _), _ = lax.scan(step, (h0, h0), jnp.transpose(feat, (1, 0, 2)))
    return h_n @ params["w_fc"].T + params["b_fc"]


def init_params(key, input_size, hidden_size, num_classes):
    ks = jax.random.split(key, 6)
    scale = 1.0 / np.sqrt(hidden_size)
    return {
        "w_ih": jax.random.uniform(ks[0], (4 * hidden_size, input_size),
                                   jnp.float32, -scale, scale),
        "w_hh": jax.random.uniform(ks[1], (4 * hidden_size, hidden_size),
                                   jnp.float32, -scale, scale),
        "b_ih": jax.random.uniform(ks[2], (4 * hidden_size,),
                                   jnp.float32, -scale, scale),
        "b_hh": jax.random.uniform(ks[3], (4 * hidden_size,),
                                   jnp.float32, -scale, scale),
        "w_fc": jax.random.uniform(ks[4], (num_classes, hidden_size),
                                   jnp.float32, -scale, scale),
        "b_fc": jax.random.uniform(ks[5], (num_classes,),
                                   jnp.float32, -scale, scale),
    }


if __name__ == "__main__":
    # Small shapes consistent with the forward: per-frame feature map (c, h, w)
    # flattened to input_size = c*h*w.
    batch, seq, c, h, w = 2, 8, 4, 4, 4
    input_size = c * h * w            # 64
    hidden_size = 32
    num_classes = 10

    key = jax.random.PRNGKey(0)
    k_x, k_p = jax.random.split(key)
    x = jax.random.normal(k_x, (batch, seq, c, h, w), jnp.float32)
    params = init_params(k_p, input_size, hidden_size, num_classes)

    prep = prepare_params(params)     # one-time weight prep (not per-forward)
    out = custom_model_forward(x, prep)
    out = jax.block_until_ready(out)

    # bf16 MXU operands vs. the f32 reference -> loosened tolerance.
    ref = jax.block_until_ready(_reference_forward(x, params))
    np.testing.assert_allclose(np.asarray(out), np.asarray(ref),
                               rtol=2e-2, atol=2e-2)
    assert out.shape == (batch, num_classes)
    print("KERNEL_OK")
</pallas_src>

<mosaic_0001>
module attributes {stable_mosaic.version = 11 : i64} {
  func.func @_lstm_fc_kernel(%arg0: memref<16x64xbf16, #tpu.memory_space<vmem>>, %arg1: memref<64x128xbf16, #tpu.memory_space<vmem>>, %arg2: memref<32x128xbf16, #tpu.memory_space<vmem>>, %arg3: memref<1x128xf32, #tpu.memory_space<vmem>>, %arg4: memref<32x128xbf16, #tpu.memory_space<vmem>>, %arg5: memref<1x128xf32, #tpu.memory_space<vmem>>, %arg6: memref<2x128xf32, #tpu.memory_space<vmem>>, %arg7: memref<16x128xf32, #tpu.memory_space<vmem>>) attributes {dimension_semantics = [], scalar_prefetch = 0 : i64, scratch_operands = 1 : i64, tpu.core_type = #tpu.core_type<tc>} {
    %c0 = arith.constant 0 : index
    %c0_0 = arith.constant 0 : index
    %0 = vector.load %arg0[%c0, %c0_0] : memref<16x64xbf16, #tpu.memory_space<vmem>>, vector<16x64xbf16>
    %c0_1 = arith.constant 0 : index
    %c0_2 = arith.constant 0 : index
    %1 = vector.load %arg1[%c0_1, %c0_2] : memref<64x128xbf16, #tpu.memory_space<vmem>>, vector<64x128xbf16>
    %cst = arith.constant dense<0.000000e+00> : vector<16x128xf32>
    %2 = tpu.matmul %0, %1, %cst {dimension_numbers = #tpu.dot_dimension_numbers<[1], [0], [0], [1], [0, 0, 1, 1], [], []>} : vector<16x64xbf16>, vector<64x128xbf16>, vector<16x128xf32> -> vector<16x128xf32>
    %c0_3 = arith.constant 0 : index
    %c0_4 = arith.constant 0 : index
    %3 = vector.load %arg3[%c0_3, %c0_4] : memref<1x128xf32, #tpu.memory_space<vmem>>, vector<1x128xf32>
    %4 = vector.broadcast %3 : vector<1x128xf32> to vector<16x128xf32>
    %5 = arith.addf %2, %4 : vector<16x128xf32>
    %c0_5 = arith.constant 0 : index
    %c0_6 = arith.constant 0 : index
    %6 = vector.load %arg7[%c0_5, %c0_6] : memref<16x128xf32, #tpu.memory_space<vmem>>, vector<16x128xf32>
    tpu.vector_store %arg7[%c0_5, %c0_6], %5 {strides = array<i32>} : memref<16x128xf32, #tpu.memory_space<vmem>>, vector<16x128xf32>,
    %c0_7 = arith.constant 0 : index
    %c0_8 = arith.constant 0 : index
    %7 = vector.load %arg2[%c0_7, %c0_8] : memref<32x128xbf16, #tpu.memory_space<vmem>>, vector<32x128xbf16>
    %cst_9 = arith.constant 0.000000e+00 : f32
    %8 = vector.broadcast %cst_9 : f32 to vector<2x32xf32>
    %cst_10 = arith.constant 0.000000e+00 : f32
    %9 = vector.broadcast %cst_10 : f32 to vector<2x32xf32>
    %c0_11 = arith.constant 0 : index
    %c0_12 = arith.constant 0 : index
    %10 = vector.load %arg7[%c0_11, %c0_12] : memref<16x128xf32, #tpu.memory_space<vmem>>, vector<2x128xf32>
    %11 = arith.truncf %8 : vector<2x32xf32> to vector<2x32xbf16>
    %cst_13 = arith.constant dense<0.000000e+00> : vector<2x128xf32>
    %12 = tpu.matmul %11, %7, %cst_13 {dimension_numbers = #tpu.dot_dimension_numbers<[1], [0], [0], [1], [0, 0, 1, 1], [], []>} : vector<2x32xbf16>, vector<32x128xbf16>, vector<2x128xf32> -> vector<2x128xf32>
    %13 = arith.addf %10, %12 : vector<2x128xf32>
    %14 = arith.negf %13 : vector<2x128xf32>
    %15 = math.exp %14 : vector<2x128xf32>
    %cst_14 = arith.constant 1.000000e+00 : f32
    %16 = vector.broadcast %cst_14 : f32 to vector<2x128xf32>
    %17 = arith.addf %16, %15 : vector<2x128xf32>
    %18 = arith.divf %16, %17 : vector<2x128xf32>
    %19 = math.tanh %13 : vector<2x128xf32>
    %20 = vector.extract_strided_slice %18 {offsets = [0, 0], sizes = [2, 32], strides = [1, 1]} : vector<2x128xf32> to vector<2x32xf32>
    %21 = vector.extract_strided_slice %18 {offsets = [0, 32], sizes = [2, 32], strides = [1, 1]} : vector<2x128xf32> to vector<2x32xf32>
    %22 = vector.extract_strided_slice %19 {offsets = [0, 64], sizes = [2, 32], strides = [1, 1]} : vector<2x128xf32> to vector<2x32xf32>
    %23 = vector.extract_strided_slice %18 {offsets = [0, 96], sizes = [2, 32], strides = [1, 1]} : vector<2x128xf32> to vector<2x32xf32>
    %24 = arith.mulf %21, %9 : vector<2x32xf32>
    %25 = arith.mulf %20, %22 : vector<2x32xf32>
    %26 = arith.addf %24, %25 : vector<2x32xf32>
    %27 = math.tanh %26 : vector<2x32xf32>
    %28 = arith.mulf %23, %27 : vector<2x32xf32>
    %c2 = arith.constant 2 : index
    %c0_15 = arith.constant 0 : index
    %29 = vector.load %arg7[%c2, %c0_15] : memref<16x128xf32, #tpu.memory_space<vmem>>, vector<2x128xf32>
    %30 = arith.truncf %28 : vector<2x32xf32> to vector<2x32xbf16>
    %cst_16 = arith.constant dense<0.000000e+00> : vector<2x128xf32>
    %31 = tpu.matmul %30, %7, %cst_16 {dimension_numbers = #tpu.dot_dimension_numbers<[1], [0], [0], [1], [0, 0, 1, 1], [], []>} : vector<2x32xbf16>, vector<32x128xbf16>, vector<2x128xf32> -> vector<2x128xf32>
    %32 = arith.addf %29, %31 : vector<2x128xf32>
    %33 = arith.negf %32 : vector<2x128xf32>
    %34 = math.exp %33 : vector<2x128xf32>
    %cst_17 = arith.constant 1.000000e+00 : f32
    %35 = vector.broadcast %cst_17 : f32 to vector<2x128xf32>
    %36 = arith.addf %35, %34 : vector<2x128xf32>
    %37 = arith.divf %35, %36 : vector<2x128xf32>
    %38 = math.tanh %32 : vector<2x128xf32>
    %39 = vector.extract_strided_slice %37 {offsets = [0, 0], sizes = [2, 32], strides = [1, 1]} : vector<2x128xf32> to vector<2x32xf32>
    %40 = vector.extract_strided_slice %37 {offsets = [0, 32], sizes = [2, 32], strides = [1, 1]} : vector<2x128xf32> to vector<2x32xf32>
    %41 = vector.extract_strided_slice %38 {offsets = [0, 64], sizes = [2, 32], strides = [1, 1]} : vector<2x128xf32> to vector<2x32xf32>
    %42 = vector.extract_strided_slice %37 {offsets = [0, 96], sizes = [2, 32], strides = [1, 1]} : vector<2x128xf32> to vector<2x32xf32>
    %43 = arith.mulf %40, %26 : vector<2x32xf32>
    %44 = arith.mulf %39, %41 : vector<2x32xf32>
    %45 = arith.addf %43, %44 : vector<2x32xf32>
    %46 = math.tanh %45 : vector<2x32xf32>
    %47 = arith.mulf %42, %46 : vector<2x32xf32>
    %c4 = arith.constant 4 : index
    %c0_18 = arith.constant 0 : index
    %48 = vector.load %arg7[%c4, %c0_18] : memref<16x128xf32, #tpu.memory_space<vmem>>, vector<2x128xf32>
    %49 = arith.truncf %47 : vector<2x32xf32> to vector<2x32xbf16>
    %cst_19 = arith.constant dense<0.000000e+00> : vector<2x128xf32>
    %50 = tpu.matmul %49, %7, %cst_19 {dimension_numbers = #tpu.dot_dimension_numbers<[1], [0], [0], [1], [0, 0, 1, 1], [], []>} : vector<2x32xbf16>, vector<32x128xbf16>, vector<2x128xf32> -> vector<2x128xf32>
    %51 = arith.addf %48, %50 : vector<2x128xf32>
    %52 = arith.negf %51 : vector<2x128xf32>
    %53 = math.exp %52 : vector<2x128xf32>
    %cst_20 = arith.constant 1.000000e+00 : f32
    %54 = vector.broadcast %cst_20 : f32 to vector<2x128xf32>
    %55 = arith.addf %54, %53 : vector<2x128xf32>
    %56 = arith.divf %54, %55 : vector<2x128xf32>
    %57 = math.tanh %51 : vector<2x128xf32>
    %58 = vector.extract_strided_slice %56 {offsets = [0, 0], sizes = [2, 32], strides = [1, 1]} : vector<2x128xf32> to vector<2x32xf32>
    %59 = vector.extract_strided_slice %56 {offsets = [0, 32], sizes = [2, 32], strides = [1, 1]} : vector<2x128xf32> to vector<2x32xf32>
    %60 = vector.extract_strided_slice %57 {offsets = [0, 64], sizes = [2, 32], strides = [1, 1]} : vector<2x128xf32> to vector<2x32xf32>
    %61 = vector.extract_strided_slice %56 {offsets = [0, 96], sizes = [2, 32], strides = [1, 1]} : vector<2x128xf32> to vector<2x32xf32>
    %62 = arith.mulf %59, %45 : vector<2x32xf32>
    %63 = arith.mulf %58, %60 : vector<2x32xf32>
    %64 = arith.addf %62, %63 : vector<2x32xf32>
    %65 = math.tanh %64 : vector<2x32xf32>
    %66 = arith.mulf %61, %65 : vector<2x32xf32>
    %c6 = arith.constant 6 : index
    %c0_21 = arith.constant 0 : index
    %67 = vector.load %arg7[%c6, %c0_21] : memref<16x128xf32, #tpu.memory_space<vmem>>, vector<2x128xf32>
    %68 = arith.truncf %66 : vector<2x32xf32> to vector<2x32xbf16>
    %cst_22 = arith.constant dense<0.000000e+00> : vector<2x128xf32>
    %69 = tpu.matmul %68, %7, %cst_22 {dimension_numbers = #tpu.dot_dimension_numbers<[1], [0], [0], [1], [0, 0, 1, 1], [], []>} : vector<2x32xbf16>, vector<32x128xbf16>, vector<2x128xf32> -> vector<2x128xf32>
    %70 = arith.addf %67, %69 : vector<2x128xf32>
    %71 = arith.negf %70 : vector<2x128xf32>
    %72 = math.exp %71 : vector<2x128xf32>
    %cst_23 = arith.constant 1.000000e+00 : f32
    %73 = vector.broadcast %cst_23 : f32 to vector<2x128xf32>
    %74 = arith.addf %73, %72 : vector<2x128xf32>
    %75 = arith.divf %73, %74 : vector<2x128xf32>
    %76 = math.tanh %70 : vector<2x128xf32>
    %77 = vector.extract_strided_slice %75 {offsets = [0, 0], sizes = [2, 32], strides = [1, 1]} : vector<2x128xf32> to vector<2x32xf32>
    %78 = vector.extract_strided_slice %75 {offsets = [0, 32], sizes = [2, 32], strides = [1, 1]} : vector<2x128xf32> to vector<2x32xf32>
    %79 = vector.extract_strided_slice %76 {offsets = [0, 64], sizes = [2, 32], strides = [1, 1]} : vector<2x128xf32> to vector<2x32xf32>
    %80 = vector.extract_strided_slice %75 {offsets = [0, 96], sizes = [2, 32], strides = [1, 1]} : vector<2x128xf32> to vector<2x32xf32>
    %81 = arith.mulf %78, %64 : vector<2x32xf32>
    %82 = arith.mulf %77, %79 : vector<2x32xf32>
    %83 = arith.addf %81, %82 : vector<2x32xf32>
    %84 = math.tanh %83 : vector<2x32xf32>
    %85 = arith.mulf %80, %84 : vector<2x32xf32>
    %c8 = arith.constant 8 : index
    %c0_24 = arith.constant 0 : index
    %86 = vector.load %arg7[%c8, %c0_24] : memref<16x128xf32, #tpu.memory_space<vmem>>, vector<2x128xf32>
    %87 = arith.truncf %85 : vector<2x32xf32> to vector<2x32xbf16>
    %cst_25 = arith.constant dense<0.000000e+00> : vector<2x128xf32>
    %88 = tpu.matmul %87, %7, %cst_25 {dimension_numbers = #tpu.dot_dimension_numbers<[1], [0], [0], [1], [0, 0, 1, 1], [], []>} : vector<2x32xbf16>, vector<32x128xbf16>, vector<2x128xf32> -> vector<2x128xf32>
    %89 = arith.addf %86, %88 : vector<2x128xf32>
    %90 = arith.negf %89 : vector<2x128xf32>
    %91 = math.exp %90 : vector<2x128xf32>
    %cst_26 = arith.constant 1.000000e+00 : f32
    %92 = vector.broadcast %cst_26 : f32 to vector<2x128xf32>
    %93 = arith.addf %92, %91 : vector<2x128xf32>
    %94 = arith.divf %92, %93 : vector<2x128xf32>
    %95 = math.tanh %89 : vector<2x128xf32>
    %96 = vector.extract_strided_slice %94 {offsets = [0, 0], sizes = [2, 32], strides = [1, 1]} : vector<2x128xf32> to vector<2x32xf32>
    %97 = vector.extract_strided_slice %94 {offsets = [0, 32], sizes = [2, 32], strides = [1, 1]} : vector<2x128xf32> to vector<2x32xf32>
    %98 = vector.extract_strided_slice %95 {offsets = [0, 64], sizes = [2, 32], strides = [1, 1]} : vector<2x128xf32> to vector<2x32xf32>
    %99 = vector.extract_strided_slice %94 {offsets = [0, 96], sizes = [2, 32], strides = [1, 1]} : vector<2x128xf32> to vector<2x32xf32>
    %100 = arith.mulf %97, %83 : vector<2x32xf32>
    %101 = arith.mulf %96, %98 : vector<2x32xf32>
    %102 = arith.addf %100, %101 : vector<2x32xf32>
    %103 = math.tanh %102 : vector<2x32xf32>
    %104 = arith.mulf %99, %103 : vector<2x32xf32>
    %c10 = arith.constant 10 : index
    %c0_27 = arith.constant 0 : index
    %105 = vector.load %arg7[%c10, %c0_27] : memref<16x128xf32, #tpu.memory_space<vmem>>, vector<2x128xf32>
    %106 = arith.truncf %104 : vector<2x32xf32> to vector<2x32xbf16>
    %cst_28 = arith.constant dense<0.000000e+00> : vector<2x128xf32>
    %107 = tpu.matmul %106, %7, %cst_28 {dimension_numbers = #tpu.dot_dimension_numbers<[1], [0], [0], [1], [0, 0, 1, 1], [], []>} : vector<2x32xbf16>, vector<32x128xbf16>, vector<2x128xf32> -> vector<2x128xf32>
    %108 = arith.addf %105, %107 : vector<2x128xf32>
    %109 = arith.negf %108 : vector<2x128xf32>
    %110 = math.exp %109 : vector<2x128xf32>
    %cst_29 = arith.constant 1.000000e+00 : f32
    %111 = vector.broadcast %cst_29 : f32 to vector<2x128xf32>
    %112 = arith.addf %111, %110 : vector<2x128xf32>
    %113 = arith.divf %111, %112 : vector<2x128xf32>
    %114 = math.tanh %108 : vector<2x128xf32>
    %115 = vector.extract_strided_slice %113 {offsets = [0, 0], sizes = [2, 32], strides = [1, 1]} : vector<2x128xf32> to vector<2x32xf32>
    %116 = vector.extract_strided_slice %113 {offsets = [0, 32], sizes = [2, 32], strides = [1, 1]} : vector<2x128xf32> to vector<2x32xf32>
    %117 = vector.extract_strided_slice %114 {offsets = [0, 64], sizes = [2, 32], strides = [1, 1]} : vector<2x128xf32> to vector<2x32xf32>
    %118 = vector.extract_strided_slice %113 {offsets = [0, 96], sizes = [2, 32], strides = [1, 1]} : vector<2x128xf32> to vector<2x32xf32>
    %119 = arith.mulf %116, %102 : vector<2x32xf32>
    %120 = arith.mulf %115, %117 : vector<2x32xf32>
    %121 = arith.addf %119, %120 : vector<2x32xf32>
    %122 = math.tanh %121 : vector<2x32xf32>
    %123 = arith.mulf %118, %122 : vector<2x32xf32>
    %c12 = arith.constant 12 : index
    %c0_30 = arith.constant 0 : index
    %124 = vector.load %arg7[%c12, %c0_30] : memref<16x128xf32, #tpu.memory_space<vmem>>, vector<2x128xf32>
    %125 = arith.truncf %123 : vector<2x32xf32> to vector<2x32xbf16>
    %cst_31 = arith.constant dense<0.000000e+00> : vector<2x128xf32>
    %126 = tpu.matmul %125, %7, %cst_31 {dimension_numbers = #tpu.dot_dimension_numbers<[1], [0], [0], [1], [0, 0, 1, 1], [], []>} : vector<2x32xbf16>, vector<32x128xbf16>, vector<2x128xf32> -> vector<2x128xf32>
    %127 = arith.addf %124, %126 : vector<2x128xf32>
    %128 = arith.negf %127 : vector<2x128xf32>
    %129 = math.exp %128 : vector<2x128xf32>
    %cst_32 = arith.constant 1.000000e+00 : f32
    %130 = vector.broadcast %cst_32 : f32 to vector<2x128xf32>
    %131 = arith.addf %130, %129 : vector<2x128xf32>
    %132 = arith.divf %130, %131 : vector<2x128xf32>
    %133 = math.tanh %127 : vector<2x128xf32>
    %134 = vector.extract_strided_slice %132 {offsets = [0, 0], sizes = [2, 32], strides = [1, 1]} : vector<2x128xf32> to vector<2x32xf32>
    %135 = vector.extract_strided_slice %132 {offsets = [0, 32], sizes = [2, 32], strides = [1, 1]} : vector<2x128xf32> to vector<2x32xf32>
    %136 = vector.extract_strided_slice %133 {offsets = [0, 64], sizes = [2, 32], strides = [1, 1]} : vector<2x128xf32> to vector<2x32xf32>
    %137 = vector.extract_strided_slice %132 {offsets = [0, 96], sizes = [2, 32], strides = [1, 1]} : vector<2x128xf32> to vector<2x32xf32>
    %138 = arith.mulf %135, %121 : vector<2x32xf32>
    %139 = arith.mulf %134, %136 : vector<2x32xf32>
    %140 = arith.addf %138, %139 : vector<2x32xf32>
    %141 = math.tanh %140 : vector<2x32xf32>
    %142 = arith.mulf %137, %141 : vector<2x32xf32>
    %c14 = arith.constant 14 : index
    %c0_33 = arith.constant 0 : index
    %143 = vector.load %arg7[%c14, %c0_33] : memref<16x128xf32, #tpu.memory_space<vmem>>, vector<2x128xf32>
    %144 = arith.truncf %142 : vector<2x32xf32> to vector<2x32xbf16>
    %cst_34 = arith.constant dense<0.000000e+00> : vector<2x128xf32>
    %145 = tpu.matmul %144, %7, %cst_34 {dimension_numbers = #tpu.dot_dimension_numbers<[1], [0], [0], [1], [0, 0, 1, 1], [], []>} : vector<2x32xbf16>, vector<32x128xbf16>, vector<2x128xf32> -> vector<2x128xf32>
    %146 = arith.addf %143, %145 : vector<2x128xf32>
    %147 = arith.negf %146 : vector<2x128xf32>
    %148 = math.exp %147 : vector<2x128xf32>
    %cst_35 = arith.constant 1.000000e+00 : f32
    %149 = vector.broadcast %cst_35 : f32 to vector<2x128xf32>
    %150 = arith.addf %149, %148 : vector<2x128xf32>
    %151 = arith.divf %149, %150 : vector<2x128xf32>
    %152 = math.tanh %146 : vector<2x128xf32>
    %153 = vector.extract_strided_slice %151 {offsets = [0, 0], sizes = [2, 32], strides = [1, 1]} : vector<2x128xf32> to vector<2x32xf32>
    %154 = vector.extract_strided_slice %151 {offsets = [0, 32], sizes = [2, 32], strides = [1, 1]} : vector<2x128xf32> to vector<2x32xf32>
    %155 = vector.extract_strided_slice %152 {offsets = [0, 64], sizes = [2, 32], strides = [1, 1]} : vector<2x128xf32> to vector<2x32xf32>
    %156 = vector.extract_strided_slice %151 {offsets = [0, 96], sizes = [2, 32], strides = [1, 1]} : vector<2x128xf32> to vector<2x32xf32>
    %157 = arith.mulf %154, %140 : vector<2x32xf32>
    %158 = arith.mulf %153, %155 : vector<2x32xf32>
    %159 = arith.addf %157, %158 : vector<2x32xf32>
    %160 = math.tanh %159 : vector<2x32xf32>
    %161 = arith.mulf %156, %160 : vector<2x32xf32>
    %162 = arith.truncf %161 : vector<2x32xf32> to vector<2x32xbf16>
    %c0_36 = arith.constant 0 : index
    %c0_37 = arith.constant 0 : index
    %163 = vector.load %arg4[%c0_36, %c0_37] : memref<32x128xbf16, #tpu.memory_space<vmem>>, vector<32x128xbf16>
    %cst_38 = arith.constant dense<0.000000e+00> : vector<2x128xf32>
    %164 = tpu.matmul %162, %163, %cst_38 {dimension_numbers = #tpu.dot_dimension_numbers<[1], [0], [0], [1], [0, 0, 1, 1], [], []>} : vector<2x32xbf16>, vector<32x128xbf16>, vector<2x128xf32> -> vector<2x128xf32>
    %c0_39 = arith.constant 0 : index
    %c0_40 = arith.constant 0 : index
    %165 = vector.load %arg5[%c0_39, %c0_40] : memref<1x128xf32, #tpu.memory_space<vmem>>, vector<1x128xf32>
    %166 = vector.broadcast %165 : vector<1x128xf32> to vector<2x128xf32>
    %167 = arith.addf %164, %166 : vector<2x128xf32>
    %c0_41 = arith.constant 0 : index
    %c0_42 = arith.constant 0 : index
    %168 = vector.load %arg6[%c0_41, %c0_42] : memref<2x128xf32, #tpu.memory_space<vmem>>, vector<2x128xf32>
    tpu.vector_store %arg6[%c0_41, %c0_42], %167 {strides = array<i32>} : memref<2x128xf32, #tpu.memory_space<vmem>>, vector<2x128xf32>,
    return
  }
}

</mosaic_0001>

<bundles_post_ra>
// kernel: tpu_custom_call.1
= control target key start
LH: loop header
LB: loop body
LE: loop exit
PB: predicated region body
PF: predicated region fallthrough
CT: control target
= control target key end

     0   :  { %11 = vsyncpa [#allocation4], 0  ;;  %s1444_s0 = inlined_call_operand.hbm [shape: bf16[16,64], index: 0, kind: input, shape index: {}]   ;;  %s1445_s1 = inlined_call_operand.hbm [shape: bf16[64,128], index: 1, kind: input, shape index: {}]   ;;  %s1446_s2 = inlined_call_operand.hbm [shape: bf16[32,128], index: 2, kind: input, shape index: {}]   ;;  %s1447_s3 = inlined_call_operand.vmem [shape: f32[1,128], index: 3, kind: input, shape index: {}]   ;;  %s1448_s4 = inlined_call_operand.hbm [shape: bf16[32,128], index: 4, kind: input, shape index: {}]   ;;  %s1449_s5 = inlined_call_operand.vmem [shape: f32[1,128], index: 5, kind: input, shape index: {}]   ;;  %s1450_s6 = inlined_call_operand.hbm [shape: f32[2,128], index: 6, kind: output, shape index: {}]  }
   0x1   :  { %12 = vsyncpa [#allocation7], 0 }
   0x2   :  { %13 = vsyncpa [#allocation10], 0 }
   0x3   :  { %14 = vsyncpa [#allocation5], 0  ;;  %s1204_s21 = smov [#allocation6]   ;;  %s1205_s23 = smov [#allocation3]  }
   0x4   :  { %s32_s22 = sshll.u32 %s1204_s21, 4  ;;  %s20_s24 = sshll.u32 %s1205_s23, 4  ;;  %s33_s22 = int_to_ptr.vmem [resolvable:$true] %s32_s22  ;;  %s1250_s24 = int_to_ptr.vmem [resolvable:$true] %s20_s24 }
   0x5   :  { %s1086_s27 = scalar_lea.hbm %s1445_s1, 512 }
   0x6   :  { %p1087_p0 = scmp.ne.s32.totalorder %s1445_s1, %s1086_s27  ;;  %p1090_p1 = scmp.lt.u32.totalorder %s1086_s27, %s1445_s1 }
   0x8   :  { %p1092_p2 = pnand %p1090_p1, %p1087_p0 }
   0xa   :  { %1095 = shalt.err (!%p1092_p2)
}
   0xb   :  { %s1096_s8 = scalar_lea.vmem %s33_s22, 512  ;;  %p1101_p4 = scmp.lt.s32.totalorder %s33_s22, %s33_s22 }
   0xc   :  { %p1097_p3 = scmp.ne.s32.totalorder %s33_s22, %s1096_s8  ;;  %p1102_p5 = scmp.lt.s32.totalorder %s1096_s8, %s1096_s8 }
   0xe   :  { %p1103_p6 = por %p1102_p5, %p1101_p4 }
  0x10   :  { %p1104_p7 = pnand %p1103_p6, %p1097_p3 }
  0x12   :  { %1107 = shalt.err (!%p1104_p7)
}
  0x13   :  { %s1206_s9 = smov 64   ;;  %s1207_s10 = smov 4  }
  0x14   :  { %38 = dma.hbm_to_vmem [thread:$0]  %s1445_s1, 512, %s33_s22, [#allocation7], %s1206_s9, %s1206_s9, %s1207_s10  }
  0x15   :  { %s1108_s15 = scalar_lea.hbm %s1444_s0, 128 }
  0x16   :  { %p1109_p8 = scmp.ne.s32.totalorder %s1444_s0, %s1108_s15  ;;  %p1112_p9 = scmp.lt.u32.totalorder %s1108_s15, %s1444_s0 }
  0x18   :  { %p1114_p10 = pnand %p1112_p9, %p1109_p8 }
  0x1a   :  { %1117 = shalt.err (!%p1114_p10)
}
  0x1b   :  { %s1118_s20 = scalar_lea.vmem %s1250_s24, 128  ;;  %p1123_p12 = scmp.lt.s32.totalorder %s1250_s24, %s1250_s24 }
  0x1c   :  { %p1119_p11 = scmp.ne.s32.totalorder %s1250_s24, %s1118_s20  ;;  %p1124_p13 = scmp.lt.s32.totalorder %s1118_s20, %s1118_s20 }
  0x1e   :  { %p1125_p0 = por %p1124_p13, %p1123_p12 }
  0x20   :  { %p1126_p1 = pnand %p1125_p0, %p1119_p11 }
  0x22   :  { %1129 = shalt.err (!%p1126_p1)
}
  0x23   :  { %26 = dma.hbm_to_vmem [thread:$0]  %s1444_s0, 128, %s1250_s24, [#allocation4], %s1206_s9, %s1206_s9, %s1207_s10  }
  0x24   :  { %s1208_s22 = smov [#allocation8]   ;;  %s1209_s25 = smov [#allocation9]  }
  0x25   :  { %s44_s23 = sshll.u32 %s1208_s22, 4  ;;  %s58_s26 = sshll.u32 %s1209_s25, 4  ;;  %s45_s23 = int_to_ptr.vmem [resolvable:$true] %s44_s23  ;;  %s1287_s26 = int_to_ptr.vmem [resolvable:$true] %s58_s26 }
  0x26   :  { %s1130_s29 = scalar_lea.hbm %s1446_s2, 256 }
  0x27   :  { %p1131_p2 = scmp.ne.s32.totalorder %s1446_s2, %s1130_s29  ;;  %p1134_p3 = scmp.lt.u32.totalorder %s1130_s29, %s1446_s2 }
  0x29   :  { %p1136_p4 = pnand %p1134_p3, %p1131_p2 }
  0x2b   :  { %1139 = shalt.err (!%p1136_p4)
}
  0x2c   :  { %s1140_s0 = scalar_lea.vmem %s45_s23, 256  ;;  %p1145_p6 = scmp.lt.s32.totalorder %s45_s23, %s45_s23 }
  0x2d   :  { %p1141_p5 = scmp.ne.s32.totalorder %s45_s23, %s1140_s0  ;;  %p1146_p7 = scmp.lt.s32.totalorder %s1140_s0, %s1140_s0 }
  0x2f   :  { %p1147_p8 = por %p1146_p7, %p1145_p6 }
  0x31   :  { %p1148_p9 = pnand %p1147_p8, %p1141_p5 }
  0x33   :  { %1151 = shalt.err (!%p1148_p9)
}
  0x34   :  { %50 = dma.hbm_to_vmem [thread:$0]  %s1446_s2, 256, %s45_s23, [#allocation7], %s1206_s9, %s1206_s9, %s1207_s10  }
  0x35   :  { %s1152_s15 = scalar_lea.hbm %s1448_s4, 256 }
  0x36   :  { %p1153_p10 = scmp.ne.s32.totalorder %s1448_s4, %s1152_s15  ;;  %p1156_p11 = scmp.lt.u32.totalorder %s1152_s15, %s1448_s4 }
  0x38   :  { %p1158_p12 = pnand %p1156_p11, %p1153_p10 }
  0x3a   :  { %1161 = shalt.err (!%p1158_p12)
}
  0x3b   :  { %s1162_s20 = scalar_lea.vmem %s1287_s26, 256  ;;  %p1167_p0 = scmp.lt.s32.totalorder %s1287_s26, %s1287_s26 }
  0x3c   :  { %p1163_p13 = scmp.ne.s32.totalorder %s1287_s26, %s1162_s20  ;;  %p1168_p1 = scmp.lt.s32.totalorder %s1162_s20, %s1162_s20 }
  0x3e   :  { %p1169_p2 = por %p1168_p1, %p1167_p0 }
  0x40   :  { %p1170_p3 = pnand %p1169_p2, %p1163_p13 }
  0x42   :  { %1173 = shalt.err (!%p1170_p3)
}
  0x43   :  { %64 = dma.hbm_to_vmem [thread:$0]  %s1448_s4, 256, %s1287_s26, [#allocation10], %s1206_s9, %s1206_s9, %s1207_s10  }
  0x44   :  { %1196 = dma.done.wait [#allocation4], 128  }
  0x45   :  { %1197 = vsyncadd [#allocation4], 4294967168 }
  0x46   :  { %1198 = dma.done.wait [#allocation7], 768  }
  0x47   :  { %1199 = vsyncadd [#allocation7], 4294966528 }
  0x48   :  { %1200 = dma.done.wait [#allocation10], 256  }
  0x49   :  { %1201 = vsyncadd [#allocation10], 4294967040  ;;  %v1210_v0 = vmov 0.0   ;;  %vm1211_vm0 = vmmov 0   ;;  %v1013_v1 = vld [vmem:[#allocation6] sm:$0xff]   ;;  %v1014_v2 = vld [vmem:[#allocation6 + $0x8] sm:$0xff]  }
  0x4a   :  { %918 = vmatprep.subr.bf16.mxu0 %v1210_v0  ;;  %926 = vmatprep.mubr.msk.bf16.mxu0 %vm1211_vm0, %v1210_v0  ;;  %v1331_v3 = vld [vmem:[#allocation8] sm:$0xff]   ;;  %v1015_v4 = vld [vmem:[#allocation6 + $0x10] sm:$0xff]   ;;  %v1335_v5 = vld [vmem:[#allocation8 + $0x8] sm:$0xff]   ;;  %vm126_vm1 = vcmask 523264   ;;  %v1212_v8 = vmov 0   ;;  %vm190_vm2 = vcmask 261120  }
  0x4b   :  { %930 = vmatprep.subr.bf16.mxu1 %v1210_v0  ;;  %934 = vmatprep.mubr.msk.bf16.mxu1 %vm1211_vm0, %v1210_v0  ;;  %v1016_v6 = vld [vmem:[#allocation6 + $0x18] sm:$0xff]   ;;  %v858_v10 = vld [vmem:[%s1447_s3] ss:$0 sm:$0xff]  ;;  %s1213_s3 = smov 32   ;;  %s1214_s23 = smov [#allocation11]  }
  0x4c   :  { %919 = vmatpush3.bf16.msra.mxu0 %v1013_v1  ;;  %931 = vmatpush3.bf16.msra.mxu1 %v1331_v3  ;;  %v1017_v7 = vld [vmem:[#allocation3] sm:$0xff]   ;;  %s847_s25 = sshll.u32 %s1214_s23, 4  ;;  %s848_s25 = int_to_ptr.vmem [resolvable:$true] %s847_s25 }
  0x4d   :  { %920 = vmatprep.subr.bf16.mxu0 %v1210_v0  ;;  %932 = vmatprep.subr.bf16.mxu1 %v1210_v0  ;;  %p1179_p5 = scmp.lt.s32.totalorder %s848_s25, %s848_s25 }
  0x50   :  { %921 = vmatpush3.bf16.msra.mxu0 %v1014_v2  ;;  %933 = vmatpush3.bf16.msra.mxu1 %v1335_v5 }
  0x51   :  { %922 = vmatprep.subr.bf16.mxu0 %v1210_v0  ;;  %938 = vmatprep.subr.bf16.mxu1 %v1210_v0 }
  0x53   :  { %935 = vmatmul.mubr.bf16.vlgmr.msra.gmra.mrb[0].mxu1 %v1212_v8 }
  0x54   :  { %923 = vmatpush3.bf16.msra.mxu0 %v1015_v4  ;;  %939 = vmatpush3.bf16.msra.mxu1 %v1331_v3 }
  0x55   :  { %924 = vmatprep.subr.bf16.mxu0 %v1210_v0  ;;  %942 = vmatprep.mubr.msk.bf16.mxu1 %vm1211_vm0, %v1210_v0 }
  0x56   :  { %940 = vmatprep.subr.bf16.mxu1 %v1210_v0 }
  0x58   :  { %925 = vmatpush3.bf16.msra.mxu0 %v1016_v6  ;;  %941 = vmatpush3.bf16.msra.mxu1 %v1335_v5 }
  0x59   :  { %946 = vmatprep.subr.bf16.mxu0 %v1210_v0  ;;  %954 = vmatprep.subr.bf16.mxu1 %v1210_v0 }
  0x5b   :  { %927 = vmatmul.mubr.msk.bf16.vlgmr.msra.gmra.mrb[0].mxu0 %vm126_vm1, %v1017_v7 }
  0x5c   :  { %947 = vmatpush3.bf16.msra.mxu0 %v1331_v3  ;;  %950 = vmatprep.mubr.msk.bf16.mxu0 %vm1211_vm0, %v1210_v0 }
  0x5d   :  { %948 = vmatprep.subr.bf16.mxu0 %v1210_v0 }
  0x60   :  { %949 = vmatpush3.bf16.msra.mxu0 %v1335_v5 }
  0x61   :  { %962 = vmatprep.subr.bf16.mxu0 %v1210_v0 }
 0x126   :  { %v228_v9 = vpop.f32.mrb[0].mxu1 }
 0x127   :  { %v936_v11 = vpop.f32.mrb[1].mxu1 }
 0x128   :  { %v231_v12 = vpop.f32.mrb[2].mxu1 }
 0x129   :  { %v937_v14 = vpop.f32.mrb[3].mxu1 }
 0x12e   :  { %v164_v13 = vpop.f32.mrb[0].mxu0 }
 0x12f   :  { %v165_v15 = vadd.f32 %v858_v10, %v164_v13  ;;  %v928_v16 = vpop.f32.mrb[1].mxu0 }
 0x130   :  { %v167_v17 = vpop.f32.mrb[2].mxu0 }
 0x131   :  { %171 = vst [vmem:[#allocation2] sm:$0xff] %v165_v15  ;;  %v168_v18 = vadd.f32 %v858_v10, %v167_v17  ;;  %v929_v19 = vpop.f32.mrb[3].mxu0 }
 0x133   :  { %172 = vst [vmem:[#allocation2 + $0x8] sm:$0xff] %v168_v18 }
 0x138   :  { %v177_v20 = vld [vmem:[#allocation2] sm:$0x3]  ;;  %v259_v37 = vld [vmem:[#allocation2 + $0x2] sm:$0x3]  ;;  %v332_v58 = vld [vmem:[#allocation2 + $0x4] sm:$0x3] }
 0x139   :  { %v234_v21 = vadd.f32 %v228_v9, %v177_v20  ;;  %v405_v18 = vld [vmem:[#allocation2 + $0x6] sm:$0x3] }
 0x13b   :  { %1022 = vtanh.f32 %v234_v21  ;;  %v867_v23 = vmul.f32 -1.442695, %v234_v21 }
 0x13d   :  { %1024 = vpow2.f32 %v867_v23 }
 0x145   :  { %v1023_v22 = vpop.eup %1022 }
 0x146   :  { %244 = vrot.lane.b32.xlu0 %v1023_v22, %s1206_s9 }
 0x147   :  { %v1025_v24 = vpop.eup %1024 }
 0x148   :  { %v238_v25 = vadd.f32 1.0, %v1025_v24 }
 0x14a   :  { %1026 = vrcp.f32 %v238_v25 }
 0x154   :  { %v1027_v26 = vpop.eup %1026 }
 0x155   :  { %v242_v29 = vmul.f32 0.0, %v1027_v26 }
 0x1b8   :  { %v245_v27 = vpop.permute.xlu0 %244 }
 0x1b9   :  { %v247_v28 = vmul.f32 %v1027_v26, %v245_v27 }
 0x1bb   :  { %249 = vrot.lane.b32.xlu0 %v247_v28, %s1213_s3 }
 0x22d   :  { %v250_v30 = vpop.permute.xlu0 %249 }
 0x22e   :  { %v252_v31 = vadd.f32 %v250_v30, %v242_v29 }
 0x230   :  { %1028 = vtanh.f32 %v252_v31 }
 0x23a   :  { %v1029_v32 = vpop.eup %1028 }
 0x23b   :  { %255 = vrot.lane.b32.xlu1 %v1029_v32, %s1206_s9 }
 0x2ad   :  { %v256_v33 = vpop.permute.xlu1 %255 }
 0x2ae   :  { %v258_v34 = vmul.f32 %v1027_v26, %v256_v33 }
 0x2b0   :  { %v260_v35 = vpack.c.bf16 %v258_v34, %v258_v34 }
 0x2b2   :  { %262 = vrot.lane.b32.xlu1 %v260_v35, %s1213_s3 }
 0x324   :  { %v263_v36 = vpop.permute.xlu1 %262 }
 0x325   :  { %943 = vmatmul.mubr.msk.bf16.vlgmr.msra.gmra.mrb[4].mxu1 %vm190_vm2, %v263_v36 }
 0x326   :  { %955 = vmatpush3.bf16.msra.mxu1 %v1331_v3  ;;  %958 = vmatprep.mubr.msk.bf16.mxu1 %vm1211_vm0, %v1210_v0 }
 0x327   :  { %956 = vmatprep.subr.bf16.mxu1 %v1210_v0 }
 0x32a   :  { %957 = vmatpush3.bf16.msra.mxu1 %v1335_v5 }
 0x32b   :  { %970 = vmatprep.subr.bf16.mxu1 %v1210_v0 }
 0x3f8   :  { %v301_v38 = vpop.f32.mrb[4].mxu1 }
 0x3f9   :  { %v307_v39 = vadd.f32 %v301_v38, %v259_v37  ;;  %v944_v40 = vpop.f32.mrb[5].mxu1 }
 0x3fa   :  { %v304_v41 = vpop.f32.mrb[6].mxu1 }
 0x3fb   :  { %1030 = vtanh.f32 %v307_v39  ;;  %v945_v42 = vpop.f32.mrb[7].mxu1  ;;  %v869_v44 = vmul.f32 -1.442695, %v307_v39  ;;  %v478_v39 = vld [vmem:[#allocation2 + $0x8] sm:$0x3] }
 0x3fd   :  { %1032 = vpow2.f32 %v869_v44 }
 0x405   :  { %v1031_v43 = vpop.eup %1030 }
 0x406   :  { %317 = vrot.lane.b32.xlu0 %v1031_v43, %s1206_s9 }
 0x407   :  { %v1033_v45 = vpop.eup %1032 }
 0x408   :  { %v311_v46 = vadd.f32 1.0, %v1033_v45 }
 0x40a   :  { %1034 = vrcp.f32 %v311_v46 }
 0x414   :  { %v1035_v47 = vpop.eup %1034 }
 0x415   :  { %v315_v50 = vmul.f32 %v1035_v47, %v252_v31 }
 0x478   :  { %v318_v48 = vpop.permute.xlu0 %317 }
 0x479   :  { %v320_v49 = vmul.f32 %v1035_v47, %v318_v48 }
 0x47b   :  { %322 = vrot.lane.b32.xlu1 %v320_v49, %s1213_s3 }
 0x4ed   :  { %v323_v51 = vpop.permute.xlu1 %322 }
 0x4ee   :  { %v325_v52 = vadd.f32 %v323_v51, %v315_v50 }
 0x4f0   :  { %1036 = vtanh.f32 %v325_v52 }
 0x4fa   :  { %v1037_v53 = vpop.eup %1036 }
 0x4fb   :  { %328 = vrot.lane.b32.xlu0 %v1037_v53, %s1206_s9 }
 0x56d   :  { %v329_v54 = vpop.permute.xlu0 %328 }
 0x56e   :  { %v331_v55 = vmul.f32 %v1035_v47, %v329_v54 }
 0x570   :  { %v333_v56 = vpack.c.bf16 %v331_v55, %v331_v55 }
 0x572   :  { %335 = vrot.lane.b32.xlu1 %v333_v56, %s1213_s3 }
 0x5e4   :  { %v336_v57 = vpop.permute.xlu1 %335 }
 0x5e5   :  { %951 = vmatmul.mubr.msk.bf16.vlgmr.msra.gmra.mrb[4].mxu0 %vm190_vm2, %v336_v57 }
 0x5e6   :  { %963 = vmatpush3.bf16.msra.mxu0 %v1331_v3  ;;  %966 = vmatprep.mubr.msk.bf16.mxu0 %vm1211_vm0, %v1210_v0 }
 0x5e7   :  { %964 = vmatprep.subr.bf16.mxu0 %v1210_v0 }
 0x5ea   :  { %965 = vmatpush3.bf16.msra.mxu0 %v1335_v5 }
 0x5eb   :  { %978 = vmatprep.subr.bf16.mxu0 %v1210_v0 }
 0x6b8   :  { %v374_v59 = vpop.f32.mrb[4].mxu0 }
 0x6b9   :  { %v380_v60 = vadd.f32 %v374_v59, %v332_v58  ;;  %v952_v61 = vpop.f32.mrb[5].mxu0 }
 0x6ba   :  { %v377_v62 = vpop.f32.mrb[6].mxu0 }
 0x6bb   :  { %1038 = vtanh.f32 %v380_v60  ;;  %v953_v63 = vpop.f32.mrb[7].mxu0  ;;  %v871_v2 = vmul.f32 -1.442695, %v380_v60  ;;  %v551_v60 = vld [vmem:[#allocation2 + $0xa] sm:$0x3] }
 0x6bd   :  { %1040 = vpow2.f32 %v871_v2 }
 0x6c5   :  { %v1039_v1 = vpop.eup %1038 }
 0x6c6   :  { %390 = vrot.lane.b32.xlu0 %v1039_v1, %s1206_s9 }
 0x6c7   :  { %v1041_v4 = vpop.eup %1040 }
 0x6c8   :  { %v384_v6 = vadd.f32 1.0, %v1041_v4 }
 0x6ca   :  { %1042 = vrcp.f32 %v384_v6 }
 0x6d4   :  { %v1043_v7 = vpop.eup %1042 }
 0x6d5   :  { %v388_v10 = vmul.f32 %v1043_v7, %v325_v52 }
 0x738   :  { %v391_v8 = vpop.permute.xlu0 %390 }
 0x739   :  { %v393_v9 = vmul.f32 %v1043_v7, %v391_v8 }
 0x73b   :  { %395 = vrot.lane.b32.xlu1 %v393_v9, %s1213_s3 }
 0x7ad   :  { %v396_v11 = vpop.permute.xlu1 %395 }
 0x7ae   :  { %v398_v12 = vadd.f32 %v396_v11, %v388_v10 }
 0x7b0   :  { %1044 = vtanh.f32 %v398_v12 }
 0x7ba   :  { %v1045_v13 = vpop.eup %1044 }
 0x7bb   :  { %401 = vrot.lane.b32.xlu0 %v1045_v13, %s1206_s9 }
 0x82d   :  { %v402_v14 = vpop.permute.xlu0 %401 }
 0x82e   :  { %v404_v15 = vmul.f32 %v1043_v7, %v402_v14 }
 0x830   :  { %v406_v16 = vpack.c.bf16 %v404_v15, %v404_v15 }
 0x832   :  { %408 = vrot.lane.b32.xlu1 %v406_v16, %s1213_s3 }
 0x8a4   :  { %v409_v17 = vpop.permute.xlu1 %408 }
 0x8a5   :  { %959 = vmatmul.mubr.msk.bf16.vlgmr.msra.gmra.mrb[8].mxu1 %vm190_vm2, %v409_v17 }
 0x8a6   :  { %971 = vmatpush3.bf16.msra.mxu1 %v1331_v3  ;;  %974 = vmatprep.mubr.msk.bf16.mxu1 %vm1211_vm0, %v1210_v0 }
 0x8a7   :  { %972 = vmatprep.subr.bf16.mxu1 %v1210_v0 }
 0x8aa   :  { %973 = vmatpush3.bf16.msra.mxu1 %v1335_v5 }
 0x8ab   :  { %986 = vmatprep.subr.bf16.mxu1 %v1210_v0 }
 0x978   :  { %v447_v19 = vpop.f32.mrb[8].mxu1 }
 0x979   :  { %v453_v20 = vadd.f32 %v447_v19, %v405_v18  ;;  %v960_v21 = vpop.f32.mrb[9].mxu1  ;;  %v624_v18 = vld [vmem:[#allocation2 + $0xc] sm:$0x3] }
 0x97a   :  { %v450_v22 = vpop.f32.mrb[10].mxu1 }
 0x97b   :  { %1046 = vtanh.f32 %v453_v20  ;;  %v961_v23 = vpop.f32.mrb[11].mxu1  ;;  %v873_v25 = vmul.f32 -1.442695, %v453_v20 }
 0x97d   :  { %1048 = vpow2.f32 %v873_v25 }
 0x985   :  { %v1047_v24 = vpop.eup %1046 }
 0x986   :  { %463 = vrot.lane.b32.xlu0 %v1047_v24, %s1206_s9 }
 0x987   :  { %v1049_v26 = vpop.eup %1048 }
 0x988   :  { %v457_v27 = vadd.f32 1.0, %v1049_v26 }
 0x98a   :  { %1050 = vrcp.f32 %v457_v27 }
 0x994   :  { %v1051_v28 = vpop.eup %1050 }
 0x995   :  { %v461_v31 = vmul.f32 %v1051_v28, %v398_v12 }
 0x9f8   :  { %v464_v29 = vpop.permute.xlu0 %463 }
 0x9f9   :  { %v466_v30 = vmul.f32 %v1051_v28, %v464_v29 }
 0x9fb   :  { %468 = vrot.lane.b32.xlu1 %v466_v30, %s1213_s3 }
 0xa6d   :  { %v469_v32 = vpop.permute.xlu1 %468 }
 0xa6e   :  { %v471_v33 = vadd.f32 %v469_v32, %v461_v31 }
 0xa70   :  { %1052 = vtanh.f32 %v471_v33 }
 0xa7a   :  { %v1053_v34 = vpop.eup %1052 }
 0xa7b   :  { %474 = vrot.lane.b32.xlu0 %v1053_v34, %s1206_s9 }
 0xaed   :  { %v475_v35 = vpop.permute.xlu0 %474 }
 0xaee   :  { %v477_v36 = vmul.f32 %v1051_v28, %v475_v35 }
 0xaf0   :  { %v479_v37 = vpack.c.bf16 %v477_v36, %v477_v36 }
 0xaf2   :  { %481 = vrot.lane.b32.xlu1 %v479_v37, %s1213_s3 }
 0xb64   :  { %v482_v38 = vpop.permute.xlu1 %481 }
 0xb65   :  { %967 = vmatmul.mubr.msk.bf16.vlgmr.msra.gmra.mrb[8].mxu0 %vm190_vm2, %v482_v38 }
 0xb66   :  { %979 = vmatpush3.bf16.msra.mxu0 %v1331_v3  ;;  %982 = vmatprep.mubr.msk.bf16.mxu0 %vm1211_vm0, %v1210_v0 }
 0xb67   :  { %980 = vmatprep.subr.bf16.mxu0 %v1210_v0 }
 0xb6a   :  { %981 = vmatpush3.bf16.msra.mxu0 %v1335_v5 }
 0xb6b   :  { %994 = vmatprep.subr.bf16.mxu0 %v1210_v0 }
 0xc38   :  { %v520_v40 = vpop.f32.mrb[8].mxu0 }
 0xc39   :  { %v526_v41 = vadd.f32 %v520_v40, %v478_v39  ;;  %v968_v42 = vpop.f32.mrb[9].mxu0  ;;  %v697_v39 = vld [vmem:[#allocation2 + $0xe] sm:$0x3] }
 0xc3a   :  { %v523_v43 = vpop.f32.mrb[10].mxu0 }
 0xc3b   :  { %1054 = vtanh.f32 %v526_v41  ;;  %v969_v44 = vpop.f32.mrb[11].mxu0  ;;  %v875_v46 = vmul.f32 -1.442695, %v526_v41 }
 0xc3d   :  { %1056 = vpow2.f32 %v875_v46 }
 0xc45   :  { %v1055_v45 = vpop.eup %1054 }
 0xc46   :  { %536 = vrot.lane.b32.xlu0 %v1055_v45, %s1206_s9 }
 0xc47   :  { %v1057_v47 = vpop.eup %1056 }
 0xc48   :  { %v530_v48 = vadd.f32 1.0, %v1057_v47 }
 0xc4a   :  { %1058 = vrcp.f32 %v530_v48 }
 0xc54   :  { %v1059_v49 = vpop.eup %1058 }
 0xc55   :  { %v534_v52 = vmul.f32 %v1059_v49, %v471_v33 }
 0xcb8   :  { %v537_v50 = vpop.permute.xlu0 %536 }
 0xcb9   :  { %v539_v51 = vmul.f32 %v1059_v49, %v537_v50 }
 0xcbb   :  { %541 = vrot.lane.b32.xlu1 %v539_v51, %s1213_s3 }
 0xd2d   :  { %v542_v53 = vpop.permute.xlu1 %541 }
 0xd2e   :  { %v544_v54 = vadd.f32 %v542_v53, %v534_v52 }
 0xd30   :  { %1060 = vtanh.f32 %v544_v54 }
 0xd3a   :  { %v1061_v55 = vpop.eup %1060 }
 0xd3b   :  { %547 = vrot.lane.b32.xlu0 %v1061_v55, %s1206_s9  ;;  %v1020_v55 = vld [vmem:[#allocation9] sm:$0xff]  }
 0xdad   :  { %v548_v56 = vpop.permute.xlu0 %547 }
 0xdae   :  { %v550_v57 = vmul.f32 %v1059_v49, %v548_v56  ;;  %v1021_v56 = vld [vmem:[#allocation9 + $0x8] sm:$0xff]  }
 0xdb0   :  { %v552_v58 = vpack.c.bf16 %v550_v57, %v550_v57 }
 0xdb2   :  { %554 = vrot.lane.b32.xlu1 %v552_v58, %s1213_s3 }
 0xe24   :  { %v555_v59 = vpop.permute.xlu1 %554 }
 0xe25   :  { %975 = vmatmul.mubr.msk.bf16.vlgmr.msra.gmra.mrb[12].mxu1 %vm190_vm2, %v555_v59 }
 0xe26   :  { %987 = vmatpush3.bf16.msra.mxu1 %v1331_v3  ;;  %990 = vmatprep.mubr.msk.bf16.mxu1 %vm1211_vm0, %v1210_v0 }
 0xe27   :  { %988 = vmatprep.subr.bf16.mxu1 %v1210_v0 }
 0xe2a   :  { %989 = vmatpush3.bf16.msra.mxu1 %v1335_v5 }
 0xef8   :  { %v593_v61 = vpop.f32.mrb[12].mxu1 }
 0xef9   :  { %v599_v62 = vadd.f32 %v593_v61, %v551_v60  ;;  %v976_v63 = vpop.f32.mrb[13].mxu1 }
 0xefa   :  { %v596_v1 = vpop.f32.mrb[14].mxu1 }
 0xefb   :  { %1062 = vtanh.f32 %v599_v62  ;;  %v977_v2 = vpop.f32.mrb[15].mxu1  ;;  %v877_v6 = vmul.f32 -1.442695, %v599_v62  ;;  %v882_v62 = vld [vmem:[%s1449_s5] ss:$0 sm:$0xff] }
 0xefd   :  { %1064 = vpow2.f32 %v877_v6 }
 0xf05   :  { %v1063_v4 = vpop.eup %1062 }
 0xf06   :  { %609 = vrot.lane.b32.xlu0 %v1063_v4, %s1206_s9 }
 0xf07   :  { %v1065_v3 = vpop.eup %1064 }
 0xf08   :  { %v603_v7 = vadd.f32 1.0, %v1065_v3 }
 0xf0a   :  { %1066 = vrcp.f32 %v603_v7 }
 0xf14   :  { %v1067_v8 = vpop.eup %1066 }
 0xf15   :  { %v607_v5 = vmul.f32 %v1067_v8, %v544_v54 }
 0xf78   :  { %v610_v9 = vpop.permute.xlu0 %609 }
 0xf79   :  { %v612_v10 = vmul.f32 %v1067_v8, %v610_v9 }
 0xf7b   :  { %614 = vrot.lane.b32.xlu1 %v612_v10, %s1213_s3 }
 0xfed   :  { %v615_v11 = vpop.permute.xlu1 %614 }
 0xfee   :  { %v617_v12 = vadd.f32 %v615_v11, %v607_v5 }
 0xff0   :  { %1068 = vtanh.f32 %v617_v12 }
 0xffa   :  { %v1069_v13 = vpop.eup %1068 }
 0xffb   :  { %620 = vrot.lane.b32.xlu0 %v1069_v13, %s1206_s9 }
0x106d   :  { %v621_v14 = vpop.permute.xlu0 %620 }
0x106e   :  { %v623_v15 = vmul.f32 %v1067_v8, %v621_v14 }
0x1070   :  { %v625_v16 = vpack.c.bf16 %v623_v15, %v623_v15 }
0x1072   :  { %627 = vrot.lane.b32.xlu1 %v625_v16, %s1213_s3 }
0x10e4   :  { %v628_v17 = vpop.permute.xlu1 %627 }
0x10e5   :  { %983 = vmatmul.mubr.msk.bf16.vlgmr.msra.gmra.mrb[12].mxu0 %vm190_vm2, %v628_v17 }
0x10e6   :  { %998 = vmatprep.mubr.msk.bf16.mxu0 %vm1211_vm0, %v1210_v0  ;;  %995 = vmatpush3.bf16.msra.mxu0 %v1020_v55 }
0x10e7   :  { %996 = vmatprep.subr.bf16.mxu0 %v1210_v0 }
0x10ea   :  { %997 = vmatpush3.bf16.msra.mxu0 %v1021_v56 }
0x11b8   :  { %v666_v19 = vpop.f32.mrb[12].mxu0 }
0x11b9   :  { %v672_v20 = vadd.f32 %v666_v19, %v624_v18  ;;  %v984_v21 = vpop.f32.mrb[13].mxu0 }
0x11ba   :  { %v669_v22 = vpop.f32.mrb[14].mxu0 }
0x11bb   :  { %1070 = vtanh.f32 %v672_v20  ;;  %v985_v23 = vpop.f32.mrb[15].mxu0  ;;  %v879_v25 = vmul.f32 -1.442695, %v672_v20 }
0x11bd   :  { %1072 = vpow2.f32 %v879_v25 }
0x11c5   :  { %v1071_v24 = vpop.eup %1070 }
0x11c6   :  { %682 = vrot.lane.b32.xlu0 %v1071_v24, %s1206_s9 }
0x11c7   :  { %v1073_v26 = vpop.eup %1072 }
0x11c8   :  { %v676_v27 = vadd.f32 1.0, %v1073_v26 }
0x11ca   :  { %1074 = vrcp.f32 %v676_v27 }
0x11d4   :  { %v1075_v28 = vpop.eup %1074 }
0x11d5   :  { %v680_v31 = vmul.f32 %v1075_v28, %v617_v12 }
0x1238   :  { %v683_v29 = vpop.permute.xlu0 %682 }
0x1239   :  { %v685_v30 = vmul.f32 %v1075_v28, %v683_v29 }
0x123b   :  { %687 = vrot.lane.b32.xlu1 %v685_v30, %s1213_s3 }
0x12ad   :  { %v688_v32 = vpop.permute.xlu1 %687 }
0x12ae   :  { %v690_v33 = vadd.f32 %v688_v32, %v680_v31 }
0x12b0   :  { %1076 = vtanh.f32 %v690_v33 }
0x12ba   :  { %v1077_v34 = vpop.eup %1076 }
0x12bb   :  { %693 = vrot.lane.b32.xlu0 %v1077_v34, %s1206_s9 }
0x132d   :  { %v694_v35 = vpop.permute.xlu0 %693 }
0x132e   :  { %v696_v36 = vmul.f32 %v1075_v28, %v694_v35 }
0x1330   :  { %v698_v37 = vpack.c.bf16 %v696_v36, %v696_v36 }
0x1332   :  { %700 = vrot.lane.b32.xlu1 %v698_v37, %s1213_s3 }
0x13a4   :  { %v701_v38 = vpop.permute.xlu1 %700 }
0x13a5   :  { %991 = vmatmul.mubr.msk.bf16.vlgmr.msra.gmra.mrb[16].mxu1 %vm190_vm2, %v701_v38 }
0x1478   :  { %v739_v40 = vpop.f32.mrb[16].mxu1 }
0x1479   :  { %v745_v41 = vadd.f32 %v739_v40, %v697_v39  ;;  %v992_v42 = vpop.f32.mrb[17].mxu1 }
0x147a   :  { %v742_v43 = vpop.f32.mrb[18].mxu1 }
0x147b   :  { %1078 = vtanh.f32 %v745_v41  ;;  %v993_v44 = vpop.f32.mrb[19].mxu1  ;;  %v881_v46 = vmul.f32 -1.442695, %v745_v41 }
0x147d   :  { %1080 = vpow2.f32 %v881_v46 }
0x1485   :  { %v1079_v45 = vpop.eup %1078 }
0x1486   :  { %755 = vrot.lane.b32.xlu0 %v1079_v45, %s1206_s9 }
0x1487   :  { %v1081_v47 = vpop.eup %1080 }
0x1488   :  { %v749_v48 = vadd.f32 1.0, %v1081_v47 }
0x148a   :  { %1082 = vrcp.f32 %v749_v48 }
0x1494   :  { %v1083_v49 = vpop.eup %1082 }
0x1495   :  { %v753_v52 = vmul.f32 %v1083_v49, %v690_v33 }
0x14f8   :  { %v756_v50 = vpop.permute.xlu0 %755 }
0x14f9   :  { %v758_v51 = vmul.f32 %v1083_v49, %v756_v50 }
0x14fb   :  { %760 = vrot.lane.b32.xlu1 %v758_v51, %s1213_s3 }
0x156d   :  { %v761_v53 = vpop.permute.xlu1 %760 }
0x156e   :  { %v763_v54 = vadd.f32 %v761_v53, %v753_v52 }
0x1570   :  { %1084 = vtanh.f32 %v763_v54 }
0x157a   :  { %v1085_v57 = vpop.eup %1084 }
0x157b   :  { %766 = vrot.lane.b32.xlu0 %v1085_v57, %s1206_s9  ;;  %s1174_s9 = scalar_lea.vmem %s848_s25, 32 }
0x157c   :  { %p1175_p4 = scmp.ne.s32.totalorder %s848_s25, %s1174_s9  ;;  %p1180_p6 = scmp.lt.s32.totalorder %s1174_s9, %s1174_s9 }
0x157e   :  { %p1181_p7 = por %p1180_p6, %p1179_p5 }
0x1580   :  { %p1182_p8 = pnand %p1181_p7, %p1175_p4 }
0x15ed   :  { %v767_v58 = vpop.permute.xlu0 %766 }
0x15ee   :  { %v769_v59 = vmul.f32 %v1083_v49, %v767_v58 }
0x15f0   :  { %v770_v60 = vpack.c.bf16 %v769_v59, %v769_v59 }
0x15f2   :  { %783 = vrot.lane.b32.xlu1 %v770_v60, %s1213_s3 }
0x1664   :  { %v784_v61 = vpop.permute.xlu1 %783 }
0x1665   :  { %999 = vmatmul.mubr.msk.bf16.vlgmr.msra.gmra.mrb[16].mxu0 %vm190_vm2, %v784_v61 }
0x1738   :  { %v834_v63 = vpop.f32.mrb[16].mxu0 }
0x1739   :  { %v835_v0 = vadd.f32 %v882_v62, %v834_v63  ;;  %v1000_v1 = vpop.f32.mrb[17].mxu0 }
0x173a   :  { %v837_v2 = vpop.f32.mrb[18].mxu0 }
0x173b   :  { %840 = vst [vmem:[#allocation11] sm:$0x3] %v835_v0  ;;  %v1001_v4 = vpop.f32.mrb[19].mxu0 }
0x173c   :  { %1185 = shalt.err (!%p1182_p8)
}
0x173d   :  { %s1186_s5 = scalar_lea.hbm %s1450_s6, 32 }
0x173e   :  { %p1187_p9 = scmp.ne.s32.totalorder %s1450_s6, %s1186_s5  ;;  %p1190_p10 = scmp.lt.u32.totalorder %s1186_s5, %s1450_s6 }
0x1740   :  { %p1192_p11 = pnand %p1190_p10, %p1187_p9 }
0x1742   :  { %1195 = shalt.err (!%p1192_p11)
}
0x1743   :  { %850 = dma.vmem_to_hbm [thread:$0]  %s848_s25, 32, %s1450_s6, [#allocation5]  }
0x1744   :  { %1202 = dma.done.wait [#allocation5], 32  }
0x1745   :  { %1203 = vsyncadd [#allocation5], 4294967264 }
0x1746   :  { %854 = vsyncpa [#allocation4], 1 }
0x1747   :  { %855 = vsyncpa [#allocation7], 1 }
0x1748   :  { %856 = vsyncpa [#allocation10], 1 }
0x1749   :  { %857 = vsyncpa [#allocation5], 1 }

</bundles_post_ra>
